<compile_context>
chip_gen: v6e
topology: v6e:2x2x1
jax: 0.10.0
libtpu: 0.0.40
codegen_flags: <defaults>
</compile_context>

<pallas_src>
import functools

import jax
import jax.numpy as jnp
from jax import lax
from jax.experimental import pallas as pl
from jax.experimental.pallas import tpu as pltpu

GAMMA = 2.0
ALPHA = 1.0
LANE = 128


def _bce_sum_kernel(x_ref, t_ref, sum_ref, *, n_valid, tm, sps, masked):
    """Accumulate the BCE-with-logits sum for this split into sum_ref[0, 0]."""
    i = pl.program_id(1)

    @pl.when(i == 0)
    def _():
        sum_ref[0, 0] = jnp.float32(0.0)

    x = x_ref[...].astype(jnp.float32)
    t = t_ref[...].astype(jnp.float32)
    # numerically stable BCE with logits: max(x,0) - x*t + log(1 + exp(-|x|))
    bce = jnp.maximum(x, 0.0) - x * t + jnp.log1p(jnp.exp(-jnp.abs(x)))

    if masked:  # static: only emitted when the flat length was padded
        row0 = (pl.program_id(0) * sps + i) * tm
        rows = lax.broadcasted_iota(jnp.int32, x.shape, 0) + row0
        lanes = lax.broadcasted_iota(jnp.int32, x.shape, 1)
        flat = rows * LANE + lanes
        bce = jnp.where(flat < n_valid, bce, 0.0)

    sum_ref[0, 0] += jnp.sum(bce)


def _focal_kernel(mean_ref, x_ref, t_ref, o_ref, *, gamma, alpha):
    """out = mean_bce * alpha * |t - sigmoid(x)|**gamma  (elementwise)."""
    x = x_ref[...].astype(jnp.float32)
    t = t_ref[...].astype(jnp.float32)
    p = 1.0 / (1.0 + jnp.exp(-x))
    d = jnp.abs(t - p)
    if gamma == 2.0:          # default: plain VPU multiply, keeps EUP slot free
        mod = d * d
    elif gamma == 1.0:
        mod = d
    else:
        mod = jnp.power(d, jnp.float32(gamma))
    o_ref[...] = (mean_ref[0] * (jnp.float32(alpha) * mod)).astype(o_ref.dtype)


def focal_loss(x, target, gamma=GAMMA, alpha=ALPHA, tm_max=512):
    """Matches FocalLoss.forward: scalar mean-BCE broadcast-multiplied by the
    elementwise modulating factor -> output has the same shape/dtype as the input."""
    orig_shape = x.shape
    orig_dtype = x.dtype
    n = x.size

    # ---- choose tiling: lane-dense (M, 128) slab, tiles of (tm, 128) rows ----
    M0 = pl.cdiv(n, LANE)                       # rows needed to hold n elements
    steps_min = pl.cdiv(M0, tm_max)
    tm = min(tm_max, ((pl.cdiv(M0, steps_min) + 7) // 8) * 8)   # (8,128)-aligned
    steps = pl.cdiv(M0, tm)
    M = steps * tm
    pad = M * LANE - n                          # flat padding (only when needed)

    xf = x.reshape(-1)
    tf = target.reshape(-1)
    if pad:
        xf = jnp.pad(xf, (0, pad))
        tf = jnp.pad(tf, (0, pad))
    x2 = xf.reshape(M, LANE)
    t2 = tf.reshape(M, LANE)

    # 2-way split of the reduction so v7x's two TensorCores can both stream HBM.
    n_splits = 2 if (steps >= 2 and steps % 2 == 0) else 1
    sps = steps // n_splits

    row_map_2d = lambda s, i: (s * sps + i, 0)
    row_map_1d = lambda i: (i, 0)

    # --- kernel 1: BCE sum reduction (per-split SMEM scalar accumulators) ---
    partials = pl.pallas_call(
        functools.partial(_bce_sum_kernel, n_valid=n, tm=tm, sps=sps,
                          masked=pad > 0),
        out_shape=jax.ShapeDtypeStruct((n_splits, 1), jnp.float32),
        grid_spec=pltpu.PrefetchScalarGridSpec(
            num_scalar_prefetch=0,
            grid=(n_splits, sps),
            in_specs=[
                pl.BlockSpec((tm, LANE), row_map_2d),
                pl.BlockSpec((tm, LANE), row_map_2d),
            ],
            out_specs=pl.BlockSpec(
                (1, 1), lambda s, i: (s, 0),
                memory_space=pltpu.MemorySpace.SMEM),
        ),
        compiler_params=pltpu.CompilerParams(
            dimension_semantics=("parallel", "arbitrary")),
    )(x2, t2)

    mean_bce = (jnp.sum(partials) / jnp.float32(n)).astype(jnp.float32).reshape(1)

    # --- kernel 2: elementwise focal modulation scaled by the scalar mean ---
    out2 = pl.pallas_call(
        functools.partial(_focal_kernel, gamma=gamma, alpha=alpha),
        out_shape=jax.ShapeDtypeStruct((M, LANE), orig_dtype),
        grid_spec=pltpu.PrefetchScalarGridSpec(
            num_scalar_prefetch=0,
            grid=(steps,),
            in_specs=[
                pl.BlockSpec(memory_space=pltpu.MemorySpace.SMEM),  # scalar mean
                pl.BlockSpec((tm, LANE), row_map_1d),
                pl.BlockSpec((tm, LANE), row_map_1d),
            ],
            out_specs=pl.BlockSpec((tm, LANE), row_map_1d),
        ),
        compiler_params=pltpu.CompilerParams(
            dimension_semantics=("parallel",)),
    )(mean_bce, x2, t2)

    out = out2.reshape(-1)
    if pad:
        out = out[:n]
    return out.reshape(orig_shape)


def _focal_loss_ref(x, target, gamma=GAMMA, alpha=ALPHA):
    """Pure-JAX reference mirroring the PyTorch module."""
    xf = x.astype(jnp.float32)
    tf = target.astype(jnp.float32)
    bce = jnp.maximum(xf, 0.0) - xf * tf + jnp.log1p(jnp.exp(-jnp.abs(xf)))
    mean_bce = jnp.mean(bce)
    p = jax.nn.sigmoid(xf)
    return (mean_bce * alpha * jnp.power(jnp.abs(tf - p), gamma)).astype(x.dtype)


if __name__ == "__main__":
    key = jax.random.PRNGKey(0)
    k1, k2 = jax.random.split(key)
    # NCHW, like the PyTorch side would feed (e.g. YOLO objectness logits).
    x = jax.random.normal(k1, (2, 4, 16, 16), dtype=jnp.float32)
    target = (jax.random.uniform(k2, (2, 4, 16, 16)) > 0.5).astype(jnp.float32)

    out = jax.block_until_ready(focal_loss(x, target))
    ref = _focal_loss_ref(x, target)

    assert out.shape == x.shape and out.dtype == x.dtype
    assert jnp.allclose(out, ref, rtol=1e-5, atol=1e-6), "mismatch vs reference"
    print("KERNEL_OK")
</pallas_src>

<mosaic_0001>
module attributes {stable_mosaic.version = 11 : i64} {
  func.func @_bce_sum_kernel(%arg0: i32, %arg1: i32, %arg2: memref<16x128xf32, #tpu.memory_space<vmem>>, %arg3: memref<16x128xf32, #tpu.memory_space<vmem>>, %arg4: memref<1x1xf32, #tpu.memory_space<smem>>) attributes {dimension_semantics = [#tpu.dimension_semantics<parallel>, #tpu.dimension_semantics<arbitrary>], iteration_bounds = array<i64: 1, 1>, scalar_prefetch = 0 : i64, scratch_operands = 0 : i64, tpu.core_type = #tpu.core_type<tc>, window_params = [{transform_indices = @transform_0, window_bounds = array<i64: 16, 128>}, {transform_indices = @transform_1, window_bounds = array<i64: 16, 128>}, {transform_indices = @transform_2, window_bounds = array<i64: 1, 1>}]} {
    %c0_i32 = arith.constant 0 : i32
    %0 = arith.cmpi eq, %arg1, %c0_i32 : i32
    %1 = arith.extui %0 : i1 to i32
    %c0_i32_0 = arith.constant 0 : i32
    %2 = arith.cmpi ne, %1, %c0_i32_0 : i32
    scf.if %2 {
      %cst_10 = arith.constant 0.000000e+00 : f32
      %c0_11 = arith.constant 0 : index
      %c0_12 = arith.constant 0 : index
      %22 = memref.load %arg4[%c0_11, %c0_12] : memref<1x1xf32, #tpu.memory_space<smem>>
      memref.store %cst_10, %arg4[%c0_11, %c0_12] : memref<1x1xf32, #tpu.memory_space<smem>>
    } else {
    }
    %c0 = arith.constant 0 : index
    %c0_1 = arith.constant 0 : index
    %3 = vector.load %arg2[%c0, %c0_1] : memref<16x128xf32, #tpu.memory_space<vmem>>, vector<16x128xf32>
    %c0_2 = arith.constant 0 : index
    %c0_3 = arith.constant 0 : index
    %4 = vector.load %arg3[%c0_2, %c0_3] : memref<16x128xf32, #tpu.memory_space<vmem>>, vector<16x128xf32>
    %cst = arith.constant 0.000000e+00 : f32
    %5 = vector.broadcast %cst : f32 to vector<16x128xf32>
    %6 = arith.maximumf %3, %5 : vector<16x128xf32>
    %7 = arith.mulf %3, %4 : vector<16x128xf32>
    %8 = arith.subf %6, %7 : vector<16x128xf32>
    %9 = math.absf %3 : vector<16x128xf32>
    %cst_4 = arith.constant 0.000000e+00 : f32
    %10 = vector.broadcast %cst_4 : f32 to vector<16x128xf32>
    %11 = arith.subf %10, %9 : vector<16x128xf32>
    %12 = math.exp %11 : vector<16x128xf32>
    %13 = math.log1p %12 : vector<16x128xf32>
    %14 = arith.addf %8, %13 : vector<16x128xf32>
    %c0_5 = arith.constant 0 : index
    %c0_6 = arith.constant 0 : index
    %15 = memref.load %arg4[%c0_5, %c0_6] : memref<1x1xf32, #tpu.memory_space<smem>>
    %16 = vector.shape_cast %14 : vector<16x128xf32> to vector<1x16x128xf32>
    %cst_7 = arith.constant dense<0.000000e+00> : vector<1xf32>
    %17 = vector.multi_reduction <add>, %16, %cst_7 [1, 2] : vector<1x16x128xf32> to vector<1xf32>
    %18 = vector.shape_cast %17 : vector<1xf32> to vector<1x1x1xf32>
    %19 = vector.extract %18[0, 0, 0] : f32 from vector<1x1x1xf32>
    %20 = arith.addf %15, %19 : f32
    %c0_8 = arith.constant 0 : index
    %c0_9 = arith.constant 0 : index
    %21 = memref.load %arg4[%c0_8, %c0_9] : memref<1x1xf32, #tpu.memory_space<smem>>
    memref.store %20, %arg4[%c0_8, %c0_9] : memref<1x1xf32, #tpu.memory_space<smem>>
    return
  }
  func.func @transform_0(%arg0: i32, %arg1: i32) -> (i32, i32) {
    %c1_i32 = arith.constant 1 : i32
    %0 = arith.muli %arg0, %c1_i32 : i32
    %1 = arith.addi %0, %arg1 : i32
    %c0_i32 = arith.constant 0 : i32
    %c0_i32_0 = arith.constant 0 : i32
    return %1, %c0_i32 : i32, i32
  }
  func.func @transform_1(%arg0: i32, %arg1: i32) -> (i32, i32) {
    %c1_i32 = arith.constant 1 : i32
    %0 = arith.muli %arg0, %c1_i32 : i32
    %1 = arith.addi %0, %arg1 : i32
    %c0_i32 = arith.constant 0 : i32
    %c0_i32_0 = arith.constant 0 : i32
    return %1, %c0_i32 : i32, i32
  }
  func.func @transform_2(%arg0: i32, %arg1: i32) -> (i32, i32) {
    %c0_i32 = arith.constant 0 : i32
    %c0_i32_0 = arith.constant 0 : i32
    return %arg0, %c0_i32 : i32, i32
  }
}

</mosaic_0001>

<bundles_post_ra>
// kernel: tpu_custom_call.1
= control target key start
LH: loop header
LB: loop body
LE: loop exit
PB: predicated region body
PF: predicated region fallthrough
CT: control target
= control target key end

     0   :  { %7 = vsyncpa [#allocation3], 0  ;;  %s224_s0 = inlined_call_operand.hbm [shape: f32[16,128], index: 0, kind: input, shape index: {}]   ;;  %s225_s1 = inlined_call_operand.hbm [shape: f32[16,128], index: 1, kind: input, shape index: {}]   ;;  %s226_s2 = inlined_call_operand.hbm [shape: f32[1,1], index: 2, kind: output, shape index: {}]  }
   0x1   :  { %8 = vsyncpa [#allocation6], 0 }
   0x2   :  { %9 = vsyncpa [#allocation4], 0  ;;  %s195_s9 = smov [#allocation2]  }
   0x3   :  { %s19_s10 = sshll.u32 %s195_s9, 4  ;;  %s20_s10 = int_to_ptr.vmem [resolvable:$true] %s19_s10 }
   0x4   :  { %s149_s11 = scalar_lea.vmem %s20_s10, 256  ;;  %p154_p1 = scmp.lt.s32.totalorder %s20_s10, %s20_s10 }
   0x5   :  { %p150_p0 = scmp.ne.s32.totalorder %s20_s10, %s149_s11  ;;  %p155_p2 = scmp.lt.s32.totalorder %s149_s11, %s149_s11 }
   0x7   :  { %p156_p3 = por %p155_p2, %p154_p1 }
   0x9   :  { %p157_p4 = pnand %p156_p3, %p150_p0 }
   0xb   :  { %160 = shalt.err (!%p157_p4)
}
   0xc   :  { %s196_s12 = smov 128   ;;  %s197_s13 = smov 8  }
   0xd   :  { %25 = dma.hbm_to_vmem [thread:$0]  %s224_s0, 256, %s20_s10, [#allocation3], %s196_s12, %s196_s12, %s197_s13  }
   0xe   :  { %s198_s16 = smov [#allocation5]  }
   0xf   :  { %s35_s17 = sshll.u32 %s198_s16, 4  ;;  %s36_s17 = int_to_ptr.vmem [resolvable:$true] %s35_s17 }
  0x10   :  { %s169_s18 = scalar_lea.vmem %s36_s17, 256  ;;  %p174_p6 = scmp.lt.s32.totalorder %s36_s17, %s36_s17 }
  0x11   :  { %p170_p5 = scmp.ne.s32.totalorder %s36_s17, %s169_s18  ;;  %p175_p7 = scmp.lt.s32.totalorder %s169_s18, %s169_s18 }
  0x13   :  { %p176_p8 = por %p175_p7, %p174_p6 }
  0x15   :  { %p177_p9 = pnand %p176_p8, %p170_p5 }
  0x17   :  { %180 = shalt.err (!%p177_p9)
}
  0x18   :  { %41 = dma.hbm_to_vmem [thread:$0]  %s225_s1, 256, %s36_s17, [#allocation6], %s196_s12, %s196_s12, %s197_s13  }
  0x19   :  { %189 = dma.done.wait [#allocation3], 256  }
  0x1a   :  { %190 = vsyncadd [#allocation3], 4294967040 }
  0x1b   :  { %191 = dma.done.wait [#allocation6], 256  }
  0x1c   :  { %192 = vsyncadd [#allocation6], 4294967040  ;;  %v58_v0 = vld [vmem:[#allocation2] sm:$0xff]  ;;  %v59_v1 = vld [vmem:[#allocation2 + $0x8] sm:$0xff]  ;;  %s199_s1 = smov [#allocation7]  }
  0x1d   :  { %v68_v2 = vand.u32 2147483647, %v58_v0  ;;  %v69_v3 = vand.u32 2147483647, %v59_v1  ;;  %v60_v14 = vld [vmem:[#allocation5] sm:$0xff]  ;;  %v61_v15 = vld [vmem:[#allocation5 + $0x8] sm:$0xff] }
  0x1e   :  { %v62_v17 = vmax.f32 %v58_v0, 0.0  ;;  %v64_v18 = vmul.f32 %v60_v14, %v58_v0  ;;  %v63_v21 = vmax.f32 %v59_v1, 0.0  ;;  %v65_v22 = vmul.f32 %v61_v15, %v59_v1 }
  0x1f   :  { %v70_v4 = vsub.f32 0.0, %v68_v2  ;;  %v71_v5 = vsub.f32 0.0, %v69_v3 }
  0x20   :  { %v66_v26 = vsub.f32 %v62_v17, %v64_v18  ;;  %v67_v29 = vsub.f32 %v63_v21, %v65_v22 }
  0x21   :  { %v72_v6 = vmul.f32 1.442695, %v70_v4  ;;  %v74_v7 = vmul.f32 1.442695, %v71_v5 }
  0x23   :  { %133 = vpow2.f32 %v72_v6 }
  0x24   :  { %135 = vpow2.f32 %v74_v7 }
  0x30   :  { %v134_v8 = vpop.eup %133 }
  0x31   :  { %v136_v9 = vpop.eup %135  ;;  %v76_v10 = vadd.f32 1.0, %v134_v8  ;;  %v79_v12 = vmul.f32 -0.5, %v134_v8  ;;  %v82_v19 = vand.u32 2147483647, %v134_v8 }
  0x32   :  { %v85_v11 = vadd.f32 1.0, %v136_v9  ;;  %v88_v13 = vmul.f32 -0.5, %v136_v9  ;;  %v91_v23 = vand.u32 2147483647, %v136_v9 }
  0x33   :  { %137 = vlog2.f32 %v76_v10  ;;  %v80_v16 = vadd.f32 1.0, %v79_v12  ;;  %vm83_vm0 = vcmp.lt.f32.partialorder %v82_v19, 0.0004427343 }
  0x34   :  { %139 = vlog2.f32 %v85_v11  ;;  %v89_v20 = vadd.f32 1.0, %v88_v13  ;;  %vm92_vm1 = vcmp.lt.f32.partialorder %v91_v23, 0.0004427343 }
  0x35   :  { %v81_v24 = vmul.f32 %v134_v8, %v80_v16 }
  0x36   :  { %v90_v27 = vmul.f32 %v136_v9, %v89_v20 }
  0x40   :  { %v138_v25 = vpop.eup %137 }
  0x41   :  { %v140_v28 = vpop.eup %139  ;;  %v78_v30 = vmul.f32 0.6931472, %v138_v25 }
  0x42   :  { %v87_v31 = vmul.f32 0.6931472, %v140_v28 }
  0x43   :  { %v84_v32 = vsel %vm83_vm0, %v81_v24, %v78_v30 }
  0x44   :  { %v93_v33 = vsel %vm92_vm1, %v90_v27, %v87_v31  ;;  %v94_v34 = vadd.f32 %v84_v32, %v66_v26 }
  0x45   :  { %v95_v35 = vadd.f32 %v93_v33, %v67_v29 }
  0x47   :  { %v97_v36 = vadd.f32 %v95_v35, %v94_v34 }
  0x49   :  { %98 = vadd.xlane.f32.xlu0 %v97_v36 }
  0xd2   :  { %v99_v37 = vpop.xlane.xlu0 %98 }
  0xd3   :  { %v100_v38 = vrot.slane %v99_v37, 4 }
  0xd5   :  { %v101_v39 = vadd.f32 %v100_v38, %v99_v37 }
  0xd7   :  { %v102_v40 = vrot.slane %v101_v39, 2 }
  0xd9   :  { %v103_v41 = vadd.f32 %v102_v40, %v101_v39 }
  0xdb   :  { %v104_v42 = vrot.slane %v103_v41, 1 }
  0xdd   :  { %v105_v43 = vadd.f32 %v104_v42, %v103_v41 }
  0xdf   :  { %125 = vpush %v105_v43 }
 0x110   :  { %s126_s0 = spop %125 }
 0x111   :  { %109 = sst [smem:[#allocation7]] %s126_s0 }
 0x112   :  { %117 = dma.smem_to_hbm %s199_s1, 16, %s226_s2, [#allocation4]  }
 0x113   :  { %193 = dma.done.wait [#allocation4], 16  }
 0x114   :  { %194 = vsyncadd [#allocation4], 4294967280 }
 0x115   :  { %121 = sfence }
 0x116   :  { %122 = vsyncpa [#allocation3], 1 }
 0x117   :  { %123 = vsyncpa [#allocation6], 1 }
 0x118   :  { %124 = vsyncpa [#allocation4], 1 }

</bundles_post_ra>
